<compile_context>
chip_gen: v6e
topology: v6e:2x2x1
jax: 0.10.0
libtpu: 0.0.40
codegen_flags: <defaults>
</compile_context>

<pallas_src>
import functools

import jax
import jax.numpy as jnp
from jax.experimental import pallas as pl
from jax.experimental.pallas import tpu as pltpu


def _round_up(x, m):
    return (x + m - 1) // m * m


def _dqn_kernel(num_layers, x_ref, *refs):
    """refs = (w0, b0, w1, b1, ..., w_{L-1}, b_{L-1}, out_ref).

    x_ref is f32 (unpadded state lanes); weights are bf16 (MXU native);
    biases / accumulation / output are f32.
    """
    out_ref = refs[-1]
    param_refs = refs[:-1]

    # Cast streamed f32 states to bf16 on the VPU (keeps the HBM stream slim).
    h = x_ref[...].astype(jnp.bfloat16)
    for layer in range(num_layers):
        w_ref = param_refs[2 * layer]
        b_ref = param_refs[2 * layer + 1]
        # MXU matmul: bf16 x bf16 -> f32 accumulator.
        acc = jnp.dot(h, w_ref[...], preferred_element_type=jnp.float32)
        acc = acc + b_ref[...]  # f32 bias add (VPU)
        if layer < num_layers - 1:
            h = jnp.maximum(acc, 0.0).astype(jnp.bfloat16)  # ReLU, back to bf16
        else:
            out_ref[...] = acc.astype(out_ref.dtype)


def prepare_dqn_params(weights, biases, *, compute_dtype=jnp.bfloat16):
    """Pad + cast the MLP parameters ONCE into kernel-ready layout.

    weights: list of (in_dim, out_dim) float32 (already transposed vs torch)
    biases : list of (out_dim,) float32
    Returns a dict consumed by dqn_forward.  Zero padding is inert: padded K
    rows are zero, padded hidden lanes stay 0 after bias(0)+ReLU, padded
    output lanes are sliced off by the wrapper.
    """
    num_layers = len(weights)
    in_dims = [w.shape[0] for w in weights]
    out_dims = [w.shape[1] for w in weights]

    # First layer's K stays near the (unpadded) streamed state_dim, only
    # rounded to an 8-sublane multiple; hidden / output dims pad to 128 lanes.
    in_dims_p = [_round_up(in_dims[0], 8)] + [_round_up(d, 128)
                                              for d in in_dims[1:]]
    out_dims_p = [_round_up(d, 128) for d in out_dims]

    w_pad, b_pad = [], []
    for l in range(num_layers):
        wp = jnp.zeros((in_dims_p[l], out_dims_p[l]), compute_dtype)
        wp = wp.at[:in_dims[l], :out_dims[l]].set(
            weights[l].astype(compute_dtype))
        bp = jnp.zeros((1, out_dims_p[l]), jnp.float32)
        bp = bp.at[0, :out_dims[l]].set(biases[l].astype(jnp.float32))
        w_pad.append(wp)
        b_pad.append(bp)

    return {
        "weights": w_pad,
        "biases": b_pad,
        "state_dim": in_dims[0],
        "action_dim": out_dims[-1],
    }


def _resident_map(i):
    # Constant block index -> weight/bias blocks stay VMEM-resident across
    # the whole batch grid.
    return (0, 0)


def dqn_forward(states, params, *, block_batch=1024):
    """Run the DQN MLP forward pass as one Pallas kernel.

    states : (batch, state_dim) float32
    params : output of prepare_dqn_params (kernel-ready padded arrays)
    returns: (batch, action_dim) float32 Q-values
    """
    weights = params["weights"]
    biases = params["biases"]
    state_dim = params["state_dim"]
    action_dim = params["action_dim"]
    num_layers = len(weights)

    sd_p = weights[0].shape[0]          # state_dim rounded to 8
    out_p_last = weights[-1].shape[1]   # action_dim rounded to 128
    batch = states.shape[0]

    states = states.astype(jnp.float32)
    if sd_p != state_dim:
        states = jnp.pad(states, ((0, 0), (0, sd_p - state_dim)))

    # Batch tiling: big tiles (grid steps are a serial loop, ~0.35 us each),
    # rounded to 16 sublanes (native bf16 vreg tile after the in-kernel cast).
    bm = min(block_batch, _round_up(batch, 16))
    bm = _round_up(bm, 16)
    batch_p = _round_up(batch, bm)
    n_tiles = batch_p // bm
    # v7x megacore: keep >= 2 (even) batch tiles for large batches so the
    # "parallel" grid axis can be split across both TensorCores; the extra
    # grid step is essentially free on v5e/v6e.
    if n_tiles == 1 and batch >= 256:
        bm = _round_up((batch + 1) // 2, 16)
        batch_p = 2 * bm
        n_tiles = 2
    if batch_p != batch:
        states = jnp.pad(states, ((0, batch_p - batch), (0, 0)))

    grid = (n_tiles,)

    args = [states]
    in_specs = [pl.BlockSpec((bm, sd_p), lambda i: (i, 0))]
    for w, b in zip(weights, biases):
        args.append(w)
        args.append(b)
        in_specs.append(pl.BlockSpec(w.shape, _resident_map))
        in_specs.append(pl.BlockSpec(b.shape, _resident_map))

    out_spec = pl.BlockSpec((bm, out_p_last), lambda i: (i, 0))
    out_shape = jax.ShapeDtypeStruct((batch_p, out_p_last), jnp.float32)

    flops = 2 * batch_p * sum(w.shape[0] * w.shape[1] for w in weights)
    bytes_accessed = (
        states.size * states.dtype.itemsize
        + sum(a.size * a.dtype.itemsize for a in args[1:])
        + batch_p * out_p_last * 4)

    kernel = functools.partial(_dqn_kernel, num_layers)

    out_p = pl.pallas_call(
        kernel,
        out_shape=out_shape,
        grid=grid,
        in_specs=in_specs,
        out_specs=out_spec,
        compiler_params=pltpu.CompilerParams(
            dimension_semantics=("parallel",),
            vmem_limit_bytes=32 * 1024 * 1024),
        cost_estimate=pl.CostEstimate(
            flops=flops, transcendentals=0, bytes_accessed=bytes_accessed),
    )(*args)

    return out_p[:batch, :action_dim]


def init_dqn_params(key, state_dim, action_dim, num_layers=3, hidden_dim=256):
    """Xavier-uniform weights / zero biases, matching _initialize_weights()."""
    dims = [state_dim] + [hidden_dim] * (num_layers - 1) + [action_dim]
    weights, biases = [], []
    for i in range(num_layers):
        fan_in, fan_out = dims[i], dims[i + 1]
        key, sub = jax.random.split(key)
        bound = jnp.sqrt(6.0 / (fan_in + fan_out))
        # Stored directly as (in_dim, out_dim) = transpose of torch layout.
        w = jax.random.uniform(sub, (fan_in, fan_out), jnp.float32,
                               minval=-bound, maxval=bound)
        b = jnp.zeros((fan_out,), jnp.float32)
        weights.append(w)
        biases.append(b)
    return weights, biases


def dqn_reference(states, weights, biases):
    """Pure-JAX reference mirroring the kernel numerics (bf16 operands,
    f32 accumulation / epilogue)."""
    h = states.astype(jnp.bfloat16).astype(jnp.float32)
    for i, (w, b) in enumerate(zip(weights, biases)):
        w32 = w.astype(jnp.bfloat16).astype(jnp.float32)
        h = jnp.dot(h, w32, precision=jax.lax.Precision.HIGHEST) + b
        if i < len(weights) - 1:
            h = jnp.maximum(h, 0.0).astype(jnp.bfloat16).astype(jnp.float32)
    return h


if __name__ == "__main__":
    key = jax.random.PRNGKey(0)

    # --- small, module-consistent shapes (single grid step) ---------------
    batch = 8
    state_dim = 16
    action_dim = 4
    num_layers = 3
    hidden_dim = 32

    key, k_x, k_p = jax.random.split(key, 3)
    states = jax.random.normal(k_x, (batch, state_dim), jnp.float32)
    weights, biases = init_dqn_params(k_p, state_dim, action_dim,
                                      num_layers=num_layers,
                                      hidden_dim=hidden_dim)
    prepared = prepare_dqn_params(weights, biases)

    out = dqn_forward(states, prepared)
    out = jax.block_until_ready(out)
    ref = dqn_reference(states, weights, biases)
    assert out.shape == (batch, action_dim)
    assert jnp.allclose(out, ref, atol=1e-4, rtol=1e-4), "mismatch (small)"

    # --- larger replay-batch shape exercising the 2-tile (v7x-even) grid ---
    batch2 = 512
    hidden2 = 256
    key, k_x2, k_p2 = jax.random.split(key, 3)
    states2 = jax.random.normal(k_x2, (batch2, state_dim), jnp.float32)
    weights2, biases2 = init_dqn_params(k_p2, state_dim, action_dim,
                                        num_layers=num_layers,
                                        hidden_dim=hidden2)
    prepared2 = prepare_dqn_params(weights2, biases2)

    out2 = dqn_forward(states2, prepared2)
    out2 = jax.block_until_ready(out2)
    ref2 = dqn_reference(states2, weights2, biases2)
    assert out2.shape == (batch2, action_dim)
    assert jnp.allclose(out2, ref2, atol=1e-4, rtol=1e-4), "mismatch (gridded)"

    print("KERNEL_OK")
</pallas_src>

<mosaic_0001>
module attributes {stable_mosaic.version = 11 : i64} {
  func.func @_dqn_kernel(%arg0: i32, %arg1: memref<16x16xf32, #tpu.memory_space<vmem>>, %arg2: memref<16x128xbf16, #tpu.memory_space<vmem>>, %arg3: memref<1x128xf32, #tpu.memory_space<vmem>>, %arg4: memref<128x128xbf16, #tpu.memory_space<vmem>>, %arg5: memref<1x128xf32, #tpu.memory_space<vmem>>, %arg6: memref<128x128xbf16, #tpu.memory_space<vmem>>, %arg7: memref<1x128xf32, #tpu.memory_space<vmem>>, %arg8: memref<16x128xf32, #tpu.memory_space<vmem>>) attributes {dimension_semantics = [#tpu.dimension_semantics<parallel>], iteration_bounds = array<i64: 1>, scalar_prefetch = 0 : i64, scratch_operands = 0 : i64, tpu.core_type = #tpu.core_type<tc>, window_params = [{transform_indices = @transform_0, window_bounds = array<i64: 16, 16>}, {pipeline_mode = #tpu.pipeline_mode<synchronous>, transform_indices = @transform_1, window_bounds = array<i64: 16, 128>}, {pipeline_mode = #tpu.pipeline_mode<synchronous>, transform_indices = @transform_2, window_bounds = array<i64: 1, 128>}, {pipeline_mode = #tpu.pipeline_mode<synchronous>, transform_indices = @transform_3, window_bounds = array<i64: 128, 128>}, {pipeline_mode = #tpu.pipeline_mode<synchronous>, transform_indices = @transform_4, window_bounds = array<i64: 1, 128>}, {pipeline_mode = #tpu.pipeline_mode<synchronous>, transform_indices = @transform_5, window_bounds = array<i64: 128, 128>}, {pipeline_mode = #tpu.pipeline_mode<synchronous>, transform_indices = @transform_6, window_bounds = array<i64: 1, 128>}, {transform_indices = @transform_7, window_bounds = array<i64: 16, 128>}]} {
    %c0 = arith.constant 0 : index
    %c0_0 = arith.constant 0 : index
    %0 = vector.load %arg1[%c0, %c0_0] : memref<16x16xf32, #tpu.memory_space<vmem>>, vector<16x16xf32>
    %1 = arith.truncf %0 : vector<16x16xf32> to vector<16x16xbf16>
    %c0_1 = arith.constant 0 : index
    %c0_2 = arith.constant 0 : index
    %2 = vector.load %arg2[%c0_1, %c0_2] : memref<16x128xbf16, #tpu.memory_space<vmem>>, vector<16x128xbf16>
    %cst = arith.constant dense<0.000000e+00> : vector<16x128xf32>
    %3 = tpu.matmul %1, %2, %cst {dimension_numbers = #tpu.dot_dimension_numbers<[1], [0], [0], [1], [0, 0, 1, 1], [], []>} : vector<16x16xbf16>, vector<16x128xbf16>, vector<16x128xf32> -> vector<16x128xf32>
    %c0_3 = arith.constant 0 : index
    %c0_4 = arith.constant 0 : index
    %4 = vector.load %arg3[%c0_3, %c0_4] : memref<1x128xf32, #tpu.memory_space<vmem>>, vector<1x128xf32>
    %5 = vector.broadcast %4 : vector<1x128xf32> to vector<16x128xf32>
    %6 = arith.addf %3, %5 : vector<16x128xf32>
    %cst_5 = arith.constant 0.000000e+00 : f32
    %7 = vector.broadcast %cst_5 : f32 to vector<16x128xf32>
    %8 = arith.maximumf %6, %7 : vector<16x128xf32>
    %9 = arith.truncf %8 : vector<16x128xf32> to vector<16x128xbf16>
    %c0_6 = arith.constant 0 : index
    %c0_7 = arith.constant 0 : index
    %10 = vector.load %arg4[%c0_6, %c0_7] : memref<128x128xbf16, #tpu.memory_space<vmem>>, vector<128x128xbf16>
    %cst_8 = arith.constant dense<0.000000e+00> : vector<16x128xf32>
    %11 = tpu.matmul %9, %10, %cst_8 {dimension_numbers = #tpu.dot_dimension_numbers<[1], [0], [0], [1], [0, 0, 1, 1], [], []>} : vector<16x128xbf16>, vector<128x128xbf16>, vector<16x128xf32> -> vector<16x128xf32>
    %c0_9 = arith.constant 0 : index
    %c0_10 = arith.constant 0 : index
    %12 = vector.load %arg5[%c0_9, %c0_10] : memref<1x128xf32, #tpu.memory_space<vmem>>, vector<1x128xf32>
    %13 = vector.broadcast %12 : vector<1x128xf32> to vector<16x128xf32>
    %14 = arith.addf %11, %13 : vector<16x128xf32>
    %cst_11 = arith.constant 0.000000e+00 : f32
    %15 = vector.broadcast %cst_11 : f32 to vector<16x128xf32>
    %16 = arith.maximumf %14, %15 : vector<16x128xf32>
    %17 = arith.truncf %16 : vector<16x128xf32> to vector<16x128xbf16>
    %c0_12 = arith.constant 0 : index
    %c0_13 = arith.constant 0 : index
    %18 = vector.load %arg6[%c0_12, %c0_13] : memref<128x128xbf16, #tpu.memory_space<vmem>>, vector<128x128xbf16>
    %cst_14 = arith.constant dense<0.000000e+00> : vector<16x128xf32>
    %19 = tpu.matmul %17, %18, %cst_14 {dimension_numbers = #tpu.dot_dimension_numbers<[1], [0], [0], [1], [0, 0, 1, 1], [], []>} : vector<16x128xbf16>, vector<128x128xbf16>, vector<16x128xf32> -> vector<16x128xf32>
    %c0_15 = arith.constant 0 : index
    %c0_16 = arith.constant 0 : index
    %20 = vector.load %arg7[%c0_15, %c0_16] : memref<1x128xf32, #tpu.memory_space<vmem>>, vector<1x128xf32>
    %21 = vector.broadcast %20 : vector<1x128xf32> to vector<16x128xf32>
    %22 = arith.addf %19, %21 : vector<16x128xf32>
    %c0_17 = arith.constant 0 : index
    %c0_18 = arith.constant 0 : index
    %23 = vector.load %arg8[%c0_17, %c0_18] : memref<16x128xf32, #tpu.memory_space<vmem>>, vector<16x128xf32>
    tpu.vector_store %arg8[%c0_17, %c0_18], %22 {strides = array<i32>} : memref<16x128xf32, #tpu.memory_space<vmem>>, vector<16x128xf32>,
    return
  }
  func.func @transform_0(%arg0: i32) -> (i32, i32) {
    %c0_i32 = arith.constant 0 : i32
    %c0_i32_0 = arith.constant 0 : i32
    return %arg0, %c0_i32 : i32, i32
  }
  func.func @transform_1(%arg0: i32) -> (i32, i32) {
    %c0_i32 = arith.constant 0 : i32
    %c0_i32_0 = arith.constant 0 : i32
    %c0_i32_1 = arith.constant 0 : i32
    return %c0_i32, %c0_i32_0 : i32, i32
  }
  func.func @transform_2(%arg0: i32) -> (i32, i32) {
    %c0_i32 = arith.constant 0 : i32
    %c0_i32_0 = arith.constant 0 : i32
    %c0_i32_1 = arith.constant 0 : i32
    return %c0_i32, %c0_i32_0 : i32, i32
  }
  func.func @transform_3(%arg0: i32) -> (i32, i32) {
    %c0_i32 = arith.constant 0 : i32
    %c0_i32_0 = arith.constant 0 : i32
    %c0_i32_1 = arith.constant 0 : i32
    return %c0_i32, %c0_i32_0 : i32, i32
  }
  func.func @transform_4(%arg0: i32) -> (i32, i32) {
    %c0_i32 = arith.constant 0 : i32
    %c0_i32_0 = arith.constant 0 : i32
    %c0_i32_1 = arith.constant 0 : i32
    return %c0_i32, %c0_i32_0 : i32, i32
  }
  func.func @transform_5(%arg0: i32) -> (i32, i32) {
    %c0_i32 = arith.constant 0 : i32
    %c0_i32_0 = arith.constant 0 : i32
    %c0_i32_1 = arith.constant 0 : i32
    return %c0_i32, %c0_i32_0 : i32, i32
  }
  func.func @transform_6(%arg0: i32) -> (i32, i32) {
    %c0_i32 = arith.constant 0 : i32
    %c0_i32_0 = arith.constant 0 : i32
    %c0_i32_1 = arith.constant 0 : i32
    return %c0_i32, %c0_i32_0 : i32, i32
  }
  func.func @transform_7(%arg0: i32) -> (i32, i32) {
    %c0_i32 = arith.constant 0 : i32
    %c0_i32_0 = arith.constant 0 : i32
    return %arg0, %c0_i32 : i32, i32
  }
}

</mosaic_0001>

<bundles_post_ra>
// kernel: tpu_custom_call.1
= control target key start
LH: loop header
LB: loop body
LE: loop exit
PB: predicated region body
PF: predicated region fallthrough
CT: control target
= control target key end

     0   :  { %12 = vsyncpa [#allocation3], 0  ;;  %s733_s0 = inlined_call_operand.hbm [shape: f32[16,16], index: 0, kind: input, shape index: {}]   ;;  %s734_s1 = inlined_call_operand.hbm [shape: bf16[16,128], index: 1, kind: input, shape index: {}]   ;;  %s735_s2 = inlined_call_operand.vmem [shape: f32[1,128], index: 2, kind: input, shape index: {}]   ;;  %s736_s3 = inlined_call_operand.hbm [shape: bf16[128,128], index: 3, kind: input, shape index: {}]   ;;  %s737_s4 = inlined_call_operand.vmem [shape: f32[1,128], index: 4, kind: input, shape index: {}]   ;;  %s738_s5 = inlined_call_operand.hbm [shape: bf16[128,128], index: 5, kind: input, shape index: {}]   ;;  %s739_s6 = inlined_call_operand.vmem [shape: f32[1,128], index: 6, kind: input, shape index: {}]   ;;  %s740_s7 = inlined_call_operand.hbm [shape: f32[16,128], index: 7, kind: output, shape index: {}]  }
   0x1   :  { %13 = vsyncpa [#allocation6], 0 }
   0x2   :  { %14 = vsyncpa [#allocation9], 0 }
   0x3   :  { %15 = vsyncpa [#allocation4], 0  ;;  %s620_s24 = smov [#allocation5]  }
   0x4   :  { %s33_s25 = sshll.u32 %s620_s24, 4  ;;  %s34_s25 = int_to_ptr.vmem [resolvable:$true] %s33_s25 }
   0x5   :  { %s520_s26 = scalar_lea.vmem %s34_s25, 128  ;;  %p525_p1 = scmp.lt.s32.totalorder %s34_s25, %s34_s25 }
   0x6   :  { %p521_p0 = scmp.ne.s32.totalorder %s34_s25, %s520_s26  ;;  %p526_p2 = scmp.lt.s32.totalorder %s520_s26, %s520_s26 }
   0x8   :  { %p527_p3 = por %p526_p2, %p525_p1 }
   0xa   :  { %p528_p4 = pnand %p527_p3, %p521_p0 }
   0xc   :  { %531 = shalt.err (!%p528_p4)
}
   0xd   :  { %s621_s27 = smov 64   ;;  %s622_s28 = smov 4  }
   0xe   :  { %39 = dma.hbm_to_vmem [thread:$0]  %s734_s1, 128, %s34_s25, [#allocation6], %s621_s27, %s621_s27, %s622_s28  }
   0xf   :  { %s623_s8 = smov [#allocation2]  }
  0x10   :  { %s21_s9 = sshll.u32 %s623_s8, 4  ;;  %s22_s9 = int_to_ptr.vmem [resolvable:$true] %s21_s9 }
  0x11   :  { %s540_s10 = scalar_lea.vmem %s22_s9, 256  ;;  %p545_p6 = scmp.lt.s32.totalorder %s22_s9, %s22_s9 }
  0x12   :  { %p541_p5 = scmp.ne.s32.totalorder %s22_s9, %s540_s10  ;;  %p546_p7 = scmp.lt.s32.totalorder %s540_s10, %s540_s10 }
  0x14   :  { %p547_p8 = por %p546_p7, %p545_p6 }
  0x16   :  { %p548_p9 = pnand %p547_p8, %p541_p5 }
  0x18   :  { %551 = shalt.err (!%p548_p9)
}
  0x19   :  { %s624_s11 = smov 128   ;;  %s625_s12 = smov 8  }
  0x1a   :  { %27 = dma.hbm_to_vmem [thread:$0]  %s733_s0, 256, %s22_s9, [#allocation3], %s624_s11, %s624_s11, %s625_s12  }
  0x1b   :  { %s626_s1 = smov [#allocation7]   ;;  %s627_s16 = smov [#allocation8]  }
  0x1c   :  { %s47_s15 = sshll.u32 %s626_s1, 4  ;;  %s61_s17 = sshll.u32 %s627_s16, 4  ;;  %s48_s15 = int_to_ptr.vmem [resolvable:$true] %s47_s15  ;;  %s62_s17 = int_to_ptr.vmem [resolvable:$true] %s61_s17 }
  0x1d   :  { %s560_s18 = scalar_lea.vmem %s48_s15, 1024  ;;  %p565_p11 = scmp.lt.s32.totalorder %s48_s15, %s48_s15 }
  0x1e   :  { %p561_p10 = scmp.ne.s32.totalorder %s48_s15, %s560_s18  ;;  %p566_p12 = scmp.lt.s32.totalorder %s560_s18, %s560_s18 }
  0x20   :  { %p567_p13 = por %p566_p12, %p565_p11 }
  0x22   :  { %p568_p0 = pnand %p567_p13, %p561_p10 }
  0x24   :  { %571 = shalt.err (!%p568_p0)
}
  0x25   :  { %53 = dma.hbm_to_vmem [thread:$0]  %s736_s3, 1024, %s48_s15, [#allocation6], %s621_s27, %s621_s27, %s622_s28  }
  0x26   :  { %s580_s0 = scalar_lea.vmem %s62_s17, 1024  ;;  %p585_p2 = scmp.lt.s32.totalorder %s62_s17, %s62_s17 }
  0x27   :  { %p581_p1 = scmp.ne.s32.totalorder %s62_s17, %s580_s0  ;;  %p586_p3 = scmp.lt.s32.totalorder %s580_s0, %s580_s0 }
  0x29   :  { %p587_p4 = por %p586_p3, %p585_p2 }
  0x2b   :  { %p588_p5 = pnand %p587_p4, %p581_p1 }
  0x2d   :  { %591 = shalt.err (!%p588_p5)
}
  0x2e   :  { %67 = dma.hbm_to_vmem [thread:$0]  %s738_s5, 1024, %s62_s17, [#allocation9], %s621_s27, %s621_s27, %s622_s28  }
  0x2f   :  { %612 = dma.done.wait [#allocation3], 256  }
  0x30   :  { %613 = vsyncadd [#allocation3], 4294967040 }
  0x31   :  { %614 = dma.done.wait [#allocation6], 1152  }
  0x32   :  { %615 = vsyncadd [#allocation6], 4294966144 }
  0x33   :  { %616 = dma.done.wait [#allocation9], 1024  }
  0x34   :  { %617 = vsyncadd [#allocation9], 4294966272  ;;  %v628_v0 = vmov 0.0   ;;  %vm629_vm0 = vmmov 0   ;;  %v495_v1 = vld [vmem:[#allocation5] sm:$0xff]   ;;  %v83_v2 = vld [vmem:[#allocation2] sm:$0xff] }
  0x35   :  { %438 = vmatprep.subr.bf16.mxu0 %v628_v0  ;;  %440 = vmatprep.mubr.msk.bf16.mxu0 %vm629_vm0, %v628_v0  ;;  %v84_v3 = vld [vmem:[#allocation2 + $0x8] sm:$0xff]  ;;  %vm101_vm1 = vcmask 130048   ;;  %v496_v5 = vld [vmem:[#allocation7 + $0x38] sm:$0xff]   ;;  %v498_v7 = vld [vmem:[#allocation7 + $0x28] sm:$0xff]   ;;  %s630_s26 = smov [#allocation10]  }
  0x36   :  { %444 = vmatprep.subr.bf16.mxu1 %v628_v0  ;;  %460 = vmatprep.mubr.msk.bf16.mxu1 %vm629_vm0, %v628_v0  ;;  %v85_v4 = vpack.c.bf16 %v84_v3, %v83_v2  ;;  %v497_v6 = vld [vmem:[#allocation7 + $0x30] sm:$0xff]   ;;  %v499_v8 = vld [vmem:[#allocation7 + $0x20] sm:$0xff]   ;;  %v500_v9 = vld [vmem:[#allocation7 + $0x18] sm:$0xff]   ;;  %s383_s27 = sshll.u32 %s630_s26, 4  ;;  %s384_s27 = int_to_ptr.vmem [resolvable:$true] %s383_s27 }
  0x37   :  { %439 = vmatpush3.bf16.msra.mxu0 %v495_v1  ;;  %445 = vmatpush3.bf16.msra.mxu1 %v496_v5  ;;  %v501_v10 = vld [vmem:[#allocation7 + $0x10] sm:$0xff]   ;;  %v502_v11 = vld [vmem:[#allocation7 + $0x8] sm:$0xff]   ;;  %v503_v12 = vld [vmem:[#allocation7] sm:$0xff]   ;;  %p597_p7 = scmp.lt.s32.totalorder %s384_s27, %s384_s27 }
  0x38   :  { %464 = vmatprep.subr.bf16.mxu0 %v628_v0  ;;  %446 = vmatprep.subr.bf16.mxu1 %v628_v0  ;;  %v504_v13 = vld [vmem:[#allocation8 + $0x38] sm:$0xff]   ;;  %v505_v14 = vld [vmem:[#allocation8 + $0x30] sm:$0xff]   ;;  %v506_v15 = vld [vmem:[#allocation8 + $0x28] sm:$0xff]  }
  0x39   :  { %v507_v16 = vld [vmem:[#allocation8 + $0x20] sm:$0xff]   ;;  %v508_v17 = vld [vmem:[#allocation8 + $0x18] sm:$0xff]   ;;  %v397_v18 = vld [vmem:[%s735_s2] ss:$0 sm:$0xff] }
  0x3a   :  { %441 = vmatmul.mubr.msk.bf16.vlgmr.msra.gmra.mxu0 %vm101_vm1, %v85_v4  ;;  %v509_v28 = vld [vmem:[#allocation8 + $0x10] sm:$0xff]   ;;  %v510_v29 = vld [vmem:[#allocation8 + $0x8] sm:$0xff]   ;;  %v511_v30 = vld [vmem:[#allocation8] sm:$0xff]  }
  0x3b   :  { %480 = vmatprep.mubr.msk.bf16.mxu0 %vm629_vm0, %v628_v0  ;;  %447 = vmatpush3.bf16.msra.mxu1 %v497_v6  ;;  %v400_v31 = vld [vmem:[%s737_s4] ss:$0 sm:$0xff]  ;;  %s592_s4 = scalar_lea.vmem %s384_s27, 256 }
  0x3c   :  { %448 = vmatprep.subr.bf16.mxu1 %v628_v0  ;;  %465 = vmatpush3.bf16.msra.mxu0 %v504_v13  ;;  %v409_v41 = vld [vmem:[%s739_s6] ss:$0 sm:$0xff]  ;;  %p593_p6 = scmp.ne.s32.totalorder %s384_s27, %s592_s4  ;;  %p598_p8 = scmp.lt.s32.totalorder %s592_s4, %s592_s4 }
  0x3d   :  { %466 = vmatprep.subr.bf16.mxu0 %v628_v0 }
  0x3e   :  { %p599_p9 = por %p598_p8, %p597_p7 }
  0x3f   :  { %449 = vmatpush3.bf16.msra.mxu1 %v498_v7 }
  0x40   :  { %450 = vmatprep.subr.bf16.mxu1 %v628_v0  ;;  %467 = vmatpush3.bf16.msra.mxu0 %v505_v14  ;;  %p600_p10 = pnand %p599_p9, %p593_p6 }
  0x41   :  { %468 = vmatprep.subr.bf16.mxu0 %v628_v0 }
  0x43   :  { %451 = vmatpush3.bf16.msra.mxu1 %v499_v8 }
  0x44   :  { %452 = vmatprep.subr.bf16.mxu1 %v628_v0  ;;  %469 = vmatpush3.bf16.msra.mxu0 %v506_v15 }
  0x45   :  { %470 = vmatprep.subr.bf16.mxu0 %v628_v0 }
  0x47   :  { %453 = vmatpush3.bf16.msra.mxu1 %v500_v9 }
  0x48   :  { %454 = vmatprep.subr.bf16.mxu1 %v628_v0  ;;  %471 = vmatpush3.bf16.msra.mxu0 %v507_v16 }
  0x49   :  { %472 = vmatprep.subr.bf16.mxu0 %v628_v0 }
  0x4b   :  { %455 = vmatpush3.bf16.msra.mxu1 %v501_v10 }
  0x4c   :  { %456 = vmatprep.subr.bf16.mxu1 %v628_v0  ;;  %473 = vmatpush3.bf16.msra.mxu0 %v508_v17 }
  0x4d   :  { %474 = vmatprep.subr.bf16.mxu0 %v628_v0 }
  0x4f   :  { %457 = vmatpush3.bf16.msra.mxu1 %v502_v11 }
  0x50   :  { %458 = vmatprep.subr.bf16.mxu1 %v628_v0  ;;  %475 = vmatpush3.bf16.msra.mxu0 %v509_v28 }
  0x51   :  { %476 = vmatprep.subr.bf16.mxu0 %v628_v0 }
  0x53   :  { %459 = vmatpush3.bf16.msra.mxu1 %v503_v12 }
  0x54   :  { %477 = vmatpush3.bf16.msra.mxu0 %v510_v29 }
  0x55   :  { %478 = vmatprep.subr.bf16.mxu0 %v628_v0 }
  0x58   :  { %479 = vmatpush3.bf16.msra.mxu0 %v511_v30 }
  0xfa   :  { %v139_v19 = vpop.f32.mrf.mxu0 }
  0xfb   :  { %v140_v21 = vadd.f32 %v397_v18, %v139_v19 }
  0xfc   :  { %v442_v20 = vpop.f32.mrf.mxu0 }
  0xfd   :  { %v146_v25 = vmax.f32 %v140_v21, 0.0 }
  0xfe   :  { %v142_v22 = vpop.f32.mrf.mxu0 }
  0xff   :  { %v143_v23 = vadd.f32 %v397_v18, %v142_v22 }
 0x100   :  { %v443_v24 = vpop.f32.mrf.mxu0 }
 0x101   :  { %v147_v26 = vmax.f32 %v143_v23, 0.0 }
 0x103   :  { %v148_v27 = vpack.c.bf16 %v147_v26, %v146_v25 }
 0x105   :  { %461 = vmatmul.mubr.bf16.vlgmr.msra.gmra.mxu1 %v148_v27 }
 0x1c5   :  { %v254_v32 = vpop.f32.mrf.mxu1 }
 0x1c6   :  { %v255_v34 = vadd.f32 %v400_v31, %v254_v32 }
 0x1c7   :  { %v462_v33 = vpop.f32.mrf.mxu1 }
 0x1c8   :  { %v261_v38 = vmax.f32 %v255_v34, 0.0 }
 0x1c9   :  { %v257_v35 = vpop.f32.mrf.mxu1 }
 0x1ca   :  { %v258_v36 = vadd.f32 %v400_v31, %v257_v35 }
 0x1cb   :  { %v463_v37 = vpop.f32.mrf.mxu1 }
 0x1cc   :  { %v262_v39 = vmax.f32 %v258_v36, 0.0 }
 0x1ce   :  { %v263_v40 = vpack.c.bf16 %v262_v39, %v261_v38 }
 0x1d0   :  { %481 = vmatmul.mubr.bf16.vlgmr.msra.gmra.mxu0 %v263_v40 }
 0x290   :  { %v369_v42 = vpop.f32.mrf.mxu0 }
 0x291   :  { %v370_v43 = vadd.f32 %v409_v41, %v369_v42 }
 0x292   :  { %v482_v44 = vpop.f32.mrf.mxu0 }
 0x293   :  { %376 = vst [vmem:[#allocation10] sm:$0xff] %v370_v43 }
 0x294   :  { %v372_v45 = vpop.f32.mrf.mxu0 }
 0x295   :  { %v373_v46 = vadd.f32 %v409_v41, %v372_v45 }
 0x296   :  { %v483_v47 = vpop.f32.mrf.mxu0 }
 0x297   :  { %377 = vst [vmem:[#allocation10 + $0x8] sm:$0xff] %v373_v46 }
 0x298   :  { %603 = shalt.err (!%p600_p10)
}
 0x299   :  { %389 = dma.vmem_to_hbm [thread:$0]  %s384_s27, 256, %s740_s7, [#allocation4], %s624_s11, %s624_s11, %s625_s12  }
 0x29a   :  { %618 = dma.done.wait [#allocation4], 256  }
 0x29b   :  { %619 = vsyncadd [#allocation4], 4294967040 }
 0x29c   :  { %393 = vsyncpa [#allocation3], 1 }
 0x29d   :  { %394 = vsyncpa [#allocation6], 1 }
 0x29e   :  { %395 = vsyncpa [#allocation9], 1 }
 0x29f   :  { %396 = vsyncpa [#allocation4], 1 }

</bundles_post_ra>
